<compile_context>
chip_gen: v7x
topology: tpu7x:2x2x1
jax: 0.10.0
libtpu: 0.0.40
codegen_flags: <defaults>
</compile_context>

<pallas_src>
import functools

import jax
import jax.numpy as jnp
from jax.experimental import pallas as pl
from jax.experimental.pallas import tpu as pltpu

# ----- architecture chosen for the synthetic ScaleNet config -----
IN_FEATURES = 32
HIDDEN = 64
OUT_FEATURES = 16

LANE = 128               # TPU lane width: hidden/output widths padded to this
BATCH = 512              # demo batch: 2 x 256-row tiles on v7x, one block elsewhere
MIN_PALLAS_BATCH = 64    # below this a pallas_call is pure overhead -> plain XLA


def _round_up(n, m):
    return ((n + m - 1) // m) * m


def _num_tensorcores():
    """2 TensorCores per chip on v7x, 1 on v5e/v6e."""
    try:
        kind = jax.devices()[0].device_kind.lower()
        return 2 if ("v7" in kind or "7x" in kind) else 1
    except Exception:
        return 1


def _pick_batch_tile(batch):
    """Host-side tile choice keyed on chip generation (perf-review item).

    v5e/v6e: single block -- extra grid steps are strictly serial per-step
    overhead on an overhead-dominated kernel.  v7x: one tile per TensorCore via
    the "parallel" grid axis.  VMEM is not a constraint at these sizes
    (~0.7 KiB/row double-buffered vs >= 64 MiB).
    """
    n_tc = _num_tensorcores()
    if n_tc > 1 and batch % 16 == 0:
        return batch // 2          # one 8-row-aligned tile per TensorCore
    return batch                   # single block: zero grid-step overhead


# ----------------------------- kernel body ---------------------------------

def _mlp_kernel(x_ref, w1_ref, b1_ref, w2_ref, b2_ref, o_ref):
    # Cast the f32 input tile to bf16 in-kernel (VPU op, hidden under DMA/MXU).
    x = x_ref[...].astype(jnp.bfloat16)
    # Linear 1 on the MXU with f32 accumulation, then bias + ReLU.
    h = jnp.dot(x, w1_ref[...], preferred_element_type=jnp.float32)
    h = jnp.maximum(h + b1_ref[...], 0.0)              # (tb, Hp) + (1, Hp)
    # Linear 2: explicit f32 -> bf16 downcast of the activation for the MXU.
    y = jnp.dot(h.astype(jnp.bfloat16), w2_ref[...],
                preferred_element_type=jnp.float32)
    # Lane-dense (tb, 128) bf16 store: unmasked vst, half the f32 writeback bytes.
    o_ref[...] = (y + b2_ref[...]).astype(o_ref.dtype)


# --------------------------- jitted hot path --------------------------------

@functools.partial(jax.jit, static_argnames=("batch_tile", "d_out"))
def _forward(x, w1p, b1p, w2p, b2p, *, batch_tile, d_out):
    batch, d_in = x.shape
    d_hidden_pad = w1p.shape[1]
    d_out_pad = w2p.shape[1]
    num_tiles = batch // batch_tile

    flops = 2 * batch * d_in * d_hidden_pad + 2 * batch * d_hidden_pad * d_out_pad
    bytes_accessed = (x.size * 4 + w1p.size * 2 + b1p.size * 4
                      + w2p.size * 2 + b2p.size * 4 + batch * d_out_pad * 2)

    out_padded = pl.pallas_call(
        _mlp_kernel,
        out_shape=jax.ShapeDtypeStruct((batch, d_out_pad), jnp.bfloat16),
        grid_spec=pltpu.PrefetchScalarGridSpec(
            num_scalar_prefetch=0,
            grid=(num_tiles,),
            in_specs=[
                pl.BlockSpec((batch_tile, d_in), lambda i: (i, 0)),         # x tile (f32)
                pl.BlockSpec((d_in, d_hidden_pad), lambda i: (0, 0)),       # W1 (resident)
                pl.BlockSpec((1, d_hidden_pad), lambda i: (0, 0)),          # b1 (resident)
                pl.BlockSpec((d_hidden_pad, d_out_pad), lambda i: (0, 0)),  # W2 (resident)
                pl.BlockSpec((1, d_out_pad), lambda i: (0, 0)),             # b2 (resident)
            ],
            out_specs=pl.BlockSpec((batch_tile, d_out_pad), lambda i: (i, 0)),
        ),
        compiler_params=pltpu.CompilerParams(
            dimension_semantics=("parallel",),      # megacore sharding on v7x
            vmem_limit_bytes=32 * 1024 * 1024,      # well under v7x's 64 MiB VMEM
        ),
        cost_estimate=pl.CostEstimate(
            flops=flops, transcendentals=0, bytes_accessed=bytes_accessed),
    )(x, w1p, b1p, w2p, b2p)

    # Slice back to the real output width + upcast; fused by XLA inside this jit.
    return out_padded[:, :d_out].astype(jnp.float32)


# ------------------------ one-time parameter prep ---------------------------

def prepare_params(w1, b1, w2, b2):
    """One-time: cast weights to bf16 and zero-pad hidden/output widths to 128."""
    d_in, d_h = w1.shape
    d_out = w2.shape[1]
    h_pad = _round_up(d_h, LANE) - d_h
    o_pad = _round_up(d_out, LANE) - d_out
    w1p = jnp.pad(w1.astype(jnp.bfloat16), ((0, 0), (0, h_pad)))
    b1p = jnp.pad(b1.astype(jnp.float32).reshape(1, -1), ((0, 0), (0, h_pad)))
    w2p = jnp.pad(w2.astype(jnp.bfloat16), ((0, h_pad), (0, o_pad)))
    b2p = jnp.pad(b2.astype(jnp.float32).reshape(1, -1), ((0, 0), (0, o_pad)))
    return w1p, b1p, w2p, b2p


class ScaleNetPallas:
    """Mirrors ScaleNet.forward: x -> Linear -> ReLU -> Linear."""

    def __init__(self, w1, b1, w2, b2):
        self.d_out = w2.shape[1]
        self.raw = (w1, b1, w2, b2)
        # Hoisted out of the per-call path (perf-review item #1).
        self.prepared = prepare_params(w1, b1, w2, b2)

    def __call__(self, x):
        batch = x.shape[0]
        # Tiny / irregular batches: a Pallas launch costs more than the work.
        if batch < MIN_PALLAS_BATCH or batch % 8 != 0:
            return reference_forward(x, *self.raw)
        batch_tile = _pick_batch_tile(batch)
        return _forward(x, *self.prepared, batch_tile=batch_tile, d_out=self.d_out)


# ------------------------------ reference -----------------------------------

def reference_forward(x, w1, b1, w2, b2):
    """Pure-JAX reference following the same bf16-operand / f32-accum path."""
    xb = x.astype(jnp.bfloat16)
    w1b = w1.astype(jnp.bfloat16)
    w2b = w2.astype(jnp.bfloat16)
    h = jnp.dot(xb, w1b, preferred_element_type=jnp.float32) + b1.astype(jnp.float32)
    h = jnp.maximum(h, 0.0)
    y = jnp.dot(h.astype(jnp.bfloat16), w2b, preferred_element_type=jnp.float32)
    return y + b2.astype(jnp.float32)


def init_params(key):
    """Deterministic init mimicking torch.nn.Linear default U(-1/sqrt(fan_in), +)."""
    k1, k2, k3, k4 = jax.random.split(key, 4)
    lim1 = 1.0 / jnp.sqrt(jnp.float32(IN_FEATURES))
    lim2 = 1.0 / jnp.sqrt(jnp.float32(HIDDEN))
    # Stored pre-transposed relative to torch, i.e. (in, out), so kernel does x @ W.
    w1 = jax.random.uniform(k1, (IN_FEATURES, HIDDEN), jnp.float32, -lim1, lim1)
    b1 = jax.random.uniform(k2, (1, HIDDEN), jnp.float32, -lim1, lim1)
    w2 = jax.random.uniform(k3, (HIDDEN, OUT_FEATURES), jnp.float32, -lim2, lim2)
    b2 = jax.random.uniform(k4, (1, OUT_FEATURES), jnp.float32, -lim2, lim2)
    return w1, b1, w2, b2


if __name__ == "__main__":
    key = jax.random.PRNGKey(0)
    k_params, k_x = jax.random.split(key)
    w1, b1, w2, b2 = init_params(k_params)
    model = ScaleNetPallas(w1, b1, w2, b2)

    # Main Pallas path (one block on v5e/v6e, two parallel 256-row tiles on v7x).
    x = jax.random.normal(k_x, (BATCH, IN_FEATURES), jnp.float32)
    out = jax.block_until_ready(model(x))
    ref = reference_forward(x, w1, b1, w2, b2)
    assert out.shape == (BATCH, OUT_FEATURES)
    assert jnp.allclose(out, ref, atol=3e-2, rtol=3e-2), float(jnp.max(jnp.abs(out - ref)))

    # Small-batch dispatch path (no Pallas launch for ~9 KFLOP of work).
    x_small = jax.random.normal(k_x, (8, IN_FEATURES), jnp.float32)
    out_small = jax.block_until_ready(model(x_small))
    assert out_small.shape == (8, OUT_FEATURES)

    print("KERNEL_OK")
</pallas_src>

<mosaic_0001>
module attributes {stable_mosaic.version = 11 : i64} {
  func.func @_mlp_kernel(%arg0: i32, %arg1: memref<512x32xf32, #tpu.memory_space<vmem>>, %arg2: memref<32x128xbf16, #tpu.memory_space<vmem>>, %arg3: memref<1x128xf32, #tpu.memory_space<vmem>>, %arg4: memref<128x128xbf16, #tpu.memory_space<vmem>>, %arg5: memref<1x128xf32, #tpu.memory_space<vmem>>, %arg6: memref<512x128xbf16, #tpu.memory_space<vmem>>) attributes {dimension_semantics = [#tpu.dimension_semantics<parallel>], iteration_bounds = array<i64: 1>, scalar_prefetch = 0 : i64, scratch_operands = 0 : i64, tpu.core_type = #tpu.core_type<tc>, window_params = [{transform_indices = @transform_0, window_bounds = array<i64: 512, 32>}, {pipeline_mode = #tpu.pipeline_mode<synchronous>, transform_indices = @transform_1, window_bounds = array<i64: 32, 128>}, {pipeline_mode = #tpu.pipeline_mode<synchronous>, transform_indices = @transform_2, window_bounds = array<i64: 1, 128>}, {pipeline_mode = #tpu.pipeline_mode<synchronous>, transform_indices = @transform_3, window_bounds = array<i64: 128, 128>}, {pipeline_mode = #tpu.pipeline_mode<synchronous>, transform_indices = @transform_4, window_bounds = array<i64: 1, 128>}, {transform_indices = @transform_5, window_bounds = array<i64: 512, 128>}]} {
    %c0 = arith.constant 0 : index
    %c0_0 = arith.constant 0 : index
    %0 = vector.load %arg1[%c0, %c0_0] : memref<512x32xf32, #tpu.memory_space<vmem>>, vector<512x32xf32>
    %1 = arith.truncf %0 : vector<512x32xf32> to vector<512x32xbf16>
    %c0_1 = arith.constant 0 : index
    %c0_2 = arith.constant 0 : index
    %2 = vector.load %arg2[%c0_1, %c0_2] : memref<32x128xbf16, #tpu.memory_space<vmem>>, vector<32x128xbf16>
    %cst = arith.constant dense<0.000000e+00> : vector<512x128xf32>
    %3 = tpu.matmul %1, %2, %cst {dimension_numbers = #tpu.dot_dimension_numbers<[1], [0], [0], [1], [0, 0, 1, 1], [], []>} : vector<512x32xbf16>, vector<32x128xbf16>, vector<512x128xf32> -> vector<512x128xf32>
    %c0_3 = arith.constant 0 : index
    %c0_4 = arith.constant 0 : index
    %4 = vector.load %arg3[%c0_3, %c0_4] : memref<1x128xf32, #tpu.memory_space<vmem>>, vector<1x128xf32>
    %5 = vector.broadcast %4 : vector<1x128xf32> to vector<512x128xf32>
    %6 = arith.addf %3, %5 : vector<512x128xf32>
    %cst_5 = arith.constant 0.000000e+00 : f32
    %7 = vector.broadcast %cst_5 : f32 to vector<512x128xf32>
    %8 = arith.maximumf %6, %7 : vector<512x128xf32>
    %9 = arith.truncf %8 : vector<512x128xf32> to vector<512x128xbf16>
    %c0_6 = arith.constant 0 : index
    %c0_7 = arith.constant 0 : index
    %10 = vector.load %arg4[%c0_6, %c0_7] : memref<128x128xbf16, #tpu.memory_space<vmem>>, vector<128x128xbf16>
    %cst_8 = arith.constant dense<0.000000e+00> : vector<512x128xf32>
    %11 = tpu.matmul %9, %10, %cst_8 {dimension_numbers = #tpu.dot_dimension_numbers<[1], [0], [0], [1], [0, 0, 1, 1], [], []>} : vector<512x128xbf16>, vector<128x128xbf16>, vector<512x128xf32> -> vector<512x128xf32>
    %c0_9 = arith.constant 0 : index
    %c0_10 = arith.constant 0 : index
    %12 = vector.load %arg5[%c0_9, %c0_10] : memref<1x128xf32, #tpu.memory_space<vmem>>, vector<1x128xf32>
    %13 = vector.broadcast %12 : vector<1x128xf32> to vector<512x128xf32>
    %14 = arith.addf %11, %13 : vector<512x128xf32>
    %15 = arith.truncf %14 : vector<512x128xf32> to vector<512x128xbf16>
    %c0_11 = arith.constant 0 : index
    %c0_12 = arith.constant 0 : index
    %16 = vector.load %arg6[%c0_11, %c0_12] : memref<512x128xbf16, #tpu.memory_space<vmem>>, vector<512x128xbf16>
    tpu.vector_store %arg6[%c0_11, %c0_12], %15 {strides = array<i32>} : memref<512x128xbf16, #tpu.memory_space<vmem>>, vector<512x128xbf16>,
    return
  }
  func.func @transform_0(%arg0: i32) -> (i32, i32) {
    %c0_i32 = arith.constant 0 : i32
    %c0_i32_0 = arith.constant 0 : i32
    return %arg0, %c0_i32 : i32, i32
  }
  func.func @transform_1(%arg0: i32) -> (i32, i32) {
    %c0_i32 = arith.constant 0 : i32
    %c0_i32_0 = arith.constant 0 : i32
    %c0_i32_1 = arith.constant 0 : i32
    return %c0_i32, %c0_i32_0 : i32, i32
  }
  func.func @transform_2(%arg0: i32) -> (i32, i32) {
    %c0_i32 = arith.constant 0 : i32
    %c0_i32_0 = arith.constant 0 : i32
    %c0_i32_1 = arith.constant 0 : i32
    return %c0_i32, %c0_i32_0 : i32, i32
  }
  func.func @transform_3(%arg0: i32) -> (i32, i32) {
    %c0_i32 = arith.constant 0 : i32
    %c0_i32_0 = arith.constant 0 : i32
    %c0_i32_1 = arith.constant 0 : i32
    return %c0_i32, %c0_i32_0 : i32, i32
  }
  func.func @transform_4(%arg0: i32) -> (i32, i32) {
    %c0_i32 = arith.constant 0 : i32
    %c0_i32_0 = arith.constant 0 : i32
    %c0_i32_1 = arith.constant 0 : i32
    return %c0_i32, %c0_i32_0 : i32, i32
  }
  func.func @transform_5(%arg0: i32) -> (i32, i32) {
    %c0_i32 = arith.constant 0 : i32
    %c0_i32_0 = arith.constant 0 : i32
    return %arg0, %c0_i32 : i32, i32
  }
}

</mosaic_0001>

<bundles_post_ra>
// kernel: _forward.1
= control target key start
LH: loop header
LB: loop body
LE: loop exit
PB: predicated region body
PF: predicated region fallthrough
CT: control target
= control target key end

     0   :  { %vm140_vm0 = vcmask 261120   ;;  %s2435_s1 = inlined_call_operand.vmem [shape: bf16[32,128], index: 1, kind: input, shape index: {}]   ;;  %s2436_s0 = inlined_call_operand.vmem [shape: f32[512,32], index: 0, kind: input, shape index: {}]   ;;  %s2437_s3 = inlined_call_operand.vmem [shape: bf16[128,128], index: 3, kind: input, shape index: {}]   ;;  %s2438_s2 = inlined_call_operand.vmem [shape: f32[1,128], index: 2, kind: input, shape index: {}]   ;;  %s2439_s4 = inlined_call_operand.vmem [shape: f32[1,128], index: 4, kind: input, shape index: {}]   ;;  %s2440_s5 = inlined_call_operand.vmem [shape: bf16[512,128], index: 5, kind: output, shape index: {}]  }
   0x1   :  { %v1907_v0 = vld [vmem:[%s2435_s1] sm:$0xff]   ;;  %v1908_v1 = vld [vmem:[%s2435_s1 + $0x8] sm:$0xff]   ;;  %v23_v5 = vld [vmem:[%s2436_s0 + $0x10] sm:$0xff] }
   0x2   :  { %1743 = vmatprep.subr.bf16.mxu0 %v1907_v0  ;;  %v21_v2 = vld [vmem:[%s2436_s0] sm:$0xff]  ;;  %v22_v3 = vld [vmem:[%s2436_s0 + $0x8] sm:$0xff]  ;;  %v24_v6 = vld [vmem:[%s2436_s0 + $0x18] sm:$0xff] }
   0x3   :  { %1744 = vmatpush3.bf16.msra.mxu0 %v1907_v0  ;;  %v85_v4 = vpack.c.bf16 %v22_v3, %v21_v2  ;;  %v25_v7 = vld [vmem:[%s2436_s0 + $0x20] sm:$0xff]  ;;  %v26_v8 = vld [vmem:[%s2436_s0 + $0x28] sm:$0xff]  ;;  %v86_v9 = vpack.c.bf16 %v24_v6, %v23_v5  ;;  %v27_v11 = vld [vmem:[%s2436_s0 + $0x30] sm:$0xff] }
   0x4   :  { %1745 = vmatprep.subr.bf16.mxu0 %v1908_v1  ;;  %v87_v10 = vpack.c.bf16 %v26_v8, %v25_v7  ;;  %v28_v12 = vld [vmem:[%s2436_s0 + $0x38] sm:$0xff]  ;;  %v29_v13 = vld [vmem:[%s2436_s0 + $0x40] sm:$0xff]  ;;  %v30_v14 = vld [vmem:[%s2436_s0 + $0x48] sm:$0xff] }
   0x5   :  { %1747 = vmatprep.mubr.msk.bf16.mxu0 %vm140_vm0, %v85_v4  ;;  %v88_v15 = vpack.c.bf16 %v28_v12, %v27_v11  ;;  %v89_v16 = vpack.c.bf16 %v30_v14, %v29_v13  ;;  %v31_v17 = vld [vmem:[%s2436_s0 + $0x50] sm:$0xff]  ;;  %v32_v18 = vld [vmem:[%s2436_s0 + $0x58] sm:$0xff]  ;;  %v33_v19 = vld [vmem:[%s2436_s0 + $0x60] sm:$0xff] }
   0x6   :  { %v34_v20 = vld [vmem:[%s2436_s0 + $0x68] sm:$0xff]  ;;  %v90_v21 = vpack.c.bf16 %v32_v18, %v31_v17  ;;  %v1909_v23 = vld [vmem:[%s2437_s3] sm:$0xff]   ;;  %v35_v24 = vld [vmem:[%s2436_s0 + $0x70] sm:$0xff] }
   0x7   :  { %1746 = vmatpush3.bf16.msra.mxu0 %v1908_v1  ;;  %v91_v22 = vpack.c.bf16 %v34_v20, %v33_v19  ;;  %v36_v25 = vld [vmem:[%s2436_s0 + $0x78] sm:$0xff]  ;;  %v1910_v26 = vld [vmem:[%s2437_s3 + $0x8] sm:$0xff]   ;;  %v37_v27 = vld [vmem:[%s2436_s0 + $0x80] sm:$0xff]  ;;  %1891 = vmatprep.subr.bf16.mxu1 %v1909_v23 }
   0x8   :  { %1811 = vmatprep.subr.bf16.mxu0 %v1909_v23  ;;  %v38_v28 = vld [vmem:[%s2436_s0 + $0x88] sm:$0xff]  ;;  %v1911_v29 = vld [vmem:[%s2437_s3 + $0x10] sm:$0xff]   ;;  %1899 = vmatpush3.bf16.msra.mxu1 %v1909_v23  ;;  %v92_v30 = vpack.c.bf16 %v36_v25, %v35_v24  ;;  %v1912_v32 = vld [vmem:[%s2437_s3 + $0x18] sm:$0xff]  }
   0x9   :  { %1892 = vmatprep.subr.bf16.mxu1 %v1910_v26  ;;  %v93_v31 = vpack.c.bf16 %v38_v28, %v37_v27  ;;  %v39_v33 = vld [vmem:[%s2436_s0 + $0x90] sm:$0xff]  ;;  %v40_v34 = vld [vmem:[%s2436_s0 + $0x98] sm:$0xff]  ;;  %v41_v35 = vld [vmem:[%s2436_s0 + $0xa0] sm:$0xff] }
   0xa   :  { %1748 = vmatmul.mubr.msk.bf16.vlgmr.msra.gmra.mrb[0].mxu0 %vm140_vm0, %v86_v9  ;;  %v42_v36 = vld [vmem:[%s2436_s0 + $0xa8] sm:$0xff]  ;;  %v1913_v37 = vld [vmem:[%s2437_s3 + $0x20] sm:$0xff]   ;;  %v94_v38 = vpack.c.bf16 %v40_v34, %v39_v33  ;;  %v43_v41 = vld [vmem:[%s2436_s0 + $0xb0] sm:$0xff] }
   0xb   :  { %1751 = vmatprep.mubr.msk.bf16.mxu0 %vm140_vm0, %v87_v10  ;;  %1812 = vmatpush3.bf16.msra.mxu0 %v1909_v23  ;;  %v95_v39 = vpack.c.bf16 %v42_v36, %v41_v35  ;;  %v1914_v40 = vld [vmem:[%s2437_s3 + $0x28] sm:$0xff]   ;;  %v44_v42 = vld [vmem:[%s2436_s0 + $0xb8] sm:$0xff]  ;;  %v45_v43 = vld [vmem:[%s2436_s0 + $0xc0] sm:$0xff] }
   0xc   :  { %1813 = vmatprep.subr.bf16.mxu0 %v1910_v26  ;;  %1900 = vmatpush3.bf16.msra.mxu1 %v1910_v26  ;;  %v46_v44 = vld [vmem:[%s2436_s0 + $0xc8] sm:$0xff]  ;;  %v96_v45 = vpack.c.bf16 %v44_v42, %v43_v41  ;;  %v47_v47 = vld [vmem:[%s2436_s0 + $0xd0] sm:$0xff]  ;;  %v48_v48 = vld [vmem:[%s2436_s0 + $0xd8] sm:$0xff] }
   0xd   :  { %1893 = vmatprep.subr.bf16.mxu1 %v1911_v29  ;;  %v97_v46 = vpack.c.bf16 %v46_v44, %v45_v43  ;;  %v49_v49 = vld [vmem:[%s2436_s0 + $0xe0] sm:$0xff]  ;;  %v50_v50 = vld [vmem:[%s2436_s0 + $0xe8] sm:$0xff]  ;;  %v98_v51 = vpack.c.bf16 %v48_v48, %v47_v47  ;;  %v51_v53 = vld [vmem:[%s2436_s0 + $0xf0] sm:$0xff] }
   0xe   :  { %v99_v52 = vpack.c.bf16 %v50_v50, %v49_v49  ;;  %v52_v54 = vld [vmem:[%s2436_s0 + $0xf8] sm:$0xff]  ;;  %v53_v55 = vld [vmem:[%s2436_s0 + $0x100] sm:$0xff]  ;;  %v54_v56 = vld [vmem:[%s2436_s0 + $0x108] sm:$0xff] }
   0xf   :  { %1814 = vmatpush3.bf16.msra.mxu0 %v1910_v26  ;;  %v100_v57 = vpack.c.bf16 %v52_v54, %v51_v53  ;;  %v101_v58 = vpack.c.bf16 %v54_v56, %v53_v55  ;;  %v55_v59 = vld [vmem:[%s2436_s0 + $0x110] sm:$0xff]  ;;  %v56_v60 = vld [vmem:[%s2436_s0 + $0x118] sm:$0xff]  ;;  %v57_v61 = vld [vmem:[%s2436_s0 + $0x120] sm:$0xff] }
  0x10   :  { %1815 = vmatprep.subr.bf16.mxu0 %v1911_v29  ;;  %1901 = vmatpush3.bf16.msra.mxu1 %v1911_v29  ;;  %v58_v62 = vld [vmem:[%s2436_s0 + $0x128] sm:$0xff]  ;;  %v102_v63 = vpack.c.bf16 %v56_v60, %v55_v59  ;;  %v59_v1 = vld [vmem:[%s2436_s0 + $0x130] sm:$0xff]  ;;  %v60_v2 = vld [vmem:[%s2436_s0 + $0x138] sm:$0xff] }
  0x11   :  { %1894 = vmatprep.subr.bf16.mxu1 %v1912_v32  ;;  %v103_v0 = vpack.c.bf16 %v58_v62, %v57_v61  ;;  %v61_v3 = vld [vmem:[%s2436_s0 + $0x140] sm:$0xff]  ;;  %v62_v4 = vld [vmem:[%s2436_s0 + $0x148] sm:$0xff]  ;;  %v104_v5 = vpack.c.bf16 %v60_v2, %v59_v1  ;;  %v63_v7 = vld [vmem:[%s2436_s0 + $0x150] sm:$0xff] }
  0x12   :  { %1752 = vmatmul.mubr.msk.bf16.gmra.mrb[4].mxu0 %vm140_vm0, %v88_v15  ;;  %v105_v6 = vpack.c.bf16 %v62_v4, %v61_v3  ;;  %v64_v8 = vld [vmem:[%s2436_s0 + $0x158] sm:$0xff]  ;;  %v65_v9 = vld [vmem:[%s2436_s0 + $0x160] sm:$0xff]  ;;  %v66_v10 = vld [vmem:[%s2436_s0 + $0x168] sm:$0xff] }
  0x13   :  { %1755 = vmatprep.mubr.msk.bf16.mxu0 %vm140_vm0, %v89_v16  ;;  %1816 = vmatpush3.bf16.msra.mxu0 %v1911_v29  ;;  %v106_v11 = vpack.c.bf16 %v64_v8, %v63_v7  ;;  %v107_v12 = vpack.c.bf16 %v66_v10, %v65_v9  ;;  %v67_v13 = vld [vmem:[%s2436_s0 + $0x170] sm:$0xff]  ;;  %v68_v14 = vld [vmem:[%s2436_s0 + $0x178] sm:$0xff]  ;;  %v69_v15 = vld [vmem:[%s2436_s0 + $0x180] sm:$0xff] }
  0x14   :  { %1817 = vmatprep.subr.bf16.mxu0 %v1912_v32  ;;  %1902 = vmatpush3.bf16.msra.mxu1 %v1912_v32  ;;  %v70_v16 = vld [vmem:[%s2436_s0 + $0x188] sm:$0xff]  ;;  %v108_v17 = vpack.c.bf16 %v68_v14, %v67_v13  ;;  %v1915_v18 = vld [vmem:[%s2437_s3 + $0x30] sm:$0xff]   ;;  %v1916_v20 = vld [vmem:[%s2437_s3 + $0x38] sm:$0xff]  }
  0x15   :  { %1895 = vmatprep.subr.bf16.mxu1 %v1913_v37  ;;  %v109_v19 = vpack.c.bf16 %v70_v16, %v69_v15  ;;  %v73_v23 = vld [vmem:[%s2436_s0 + $0x1a0] sm:$0xff]  ;;  %v74_v24 = vld [vmem:[%s2436_s0 + $0x1a8] sm:$0xff]  ;;  %v75_v27 = vld [vmem:[%s2436_s0 + $0x1b0] sm:$0xff] }
  0x16   :  { %v111_v26 = vpack.c.bf16 %v74_v24, %v73_v23  ;;  %v76_v28 = vld [vmem:[%s2436_s0 + $0x1b8] sm:$0xff]  ;;  %v77_v29 = vld [vmem:[%s2436_s0 + $0x1c0] sm:$0xff]  ;;  %v79_v33 = vld [vmem:[%s2436_s0 + $0x1d0] sm:$0xff] }
  0x17   :  { %1818 = vmatpush3.bf16.msra.mxu0 %v1912_v32  ;;  %v80_v34 = vld [vmem:[%s2436_s0 + $0x1d8] sm:$0xff]  ;;  %v81_v35 = vld [vmem:[%s2436_s0 + $0x1e0] sm:$0xff]  ;;  %v82_v36 = vld [vmem:[%s2436_s0 + $0x1e8] sm:$0xff] }
  0x18   :  { %1819 = vmatprep.subr.bf16.mxu0 %v1913_v37  ;;  %1903 = vmatpush3.bf16.msra.mxu1 %v1913_v37  ;;  %v2204_v42 = vld [vmem:[%s2438_s2] ss:$0 sm:$0xff] }
  0x19   :  { %1896 = vmatprep.subr.bf16.mxu1 %v1914_v40 }
  0x1a   :  { %1756 = vmatmul.mubr.msk.bf16.gmra.mrb[8].mxu0 %vm140_vm0, %v90_v21  ;;  %v71_v21 = vld [vmem:[%s2436_s0 + $0x190] sm:$0xff] }
  0x1b   :  { %1759 = vmatprep.mubr.msk.bf16.mxu0 %vm140_vm0, %v91_v22  ;;  %1820 = vmatpush3.bf16.msra.mxu0 %v1913_v37  ;;  %v72_v22 = vld [vmem:[%s2436_s0 + $0x198] sm:$0xff]  ;;  %v114_v37 = vpack.c.bf16 %v80_v34, %v79_v33 }
  0x1c   :  { %1821 = vmatprep.subr.bf16.mxu0 %v1914_v40  ;;  %1904 = vmatpush3.bf16.msra.mxu1 %v1914_v40  ;;  %v110_v25 = vpack.c.bf16 %v72_v22, %v71_v21 }
  0x1d   :  { %1897 = vmatprep.subr.bf16.mxu1 %v1915_v18 }
  0x1f   :  { %1822 = vmatpush3.bf16.msra.mxu0 %v1914_v40  ;;  %v84_v40 = vld [vmem:[%s2436_s0 + $0x1f8] sm:$0xff] }
  0x20   :  { %1823 = vmatprep.subr.bf16.mxu0 %v1915_v18  ;;  %1905 = vmatpush3.bf16.msra.mxu1 %v1915_v18 }
  0x21   :  { %1898 = vmatprep.subr.bf16.mxu1 %v1916_v20 }
  0x22   :  { %1760 = vmatmul.mubr.msk.bf16.gmra.mrb[12].mxu0 %vm140_vm0, %v92_v30  ;;  %v78_v30 = vld [vmem:[%s2436_s0 + $0x1c8] sm:$0xff] }
  0x23   :  { %1763 = vmatprep.mubr.msk.bf16.mxu0 %vm140_vm0, %v93_v31  ;;  %1824 = vmatpush3.bf16.msra.mxu0 %v1915_v18  ;;  %v112_v31 = vpack.c.bf16 %v76_v28, %v75_v27  ;;  %v113_v32 = vpack.c.bf16 %v78_v30, %v77_v29 }
  0x24   :  { %1825 = vmatprep.subr.bf16.mxu0 %v1916_v20  ;;  %1906 = vmatpush3.bf16.msra.mxu1 %v1916_v20 }
  0x27   :  { %1826 = vmatpush3.bf16.msra.mxu0 %v1916_v20 }
  0x2a   :  { %1764 = vmatmul.mubr.msk.bf16.gmra.mrb[16].mxu0 %vm140_vm0, %v94_v38  ;;  %v115_v38 = vpack.c.bf16 %v82_v36, %v81_v35 }
  0x2b   :  { %1767 = vmatprep.mubr.msk.bf16.mxu0 %vm140_vm0, %v95_v39  ;;  %v83_v39 = vld [vmem:[%s2436_s0 + $0x1f0] sm:$0xff] }
  0x2c   :  { %v116_v41 = vpack.c.bf16 %v84_v40, %v83_v39 }
  0x32   :  { %1768 = vmatmul.mubr.msk.bf16.gmra.mrb[20].mxu0 %vm140_vm0, %v96_v45 }
  0x33   :  { %1771 = vmatprep.mubr.msk.bf16.mxu0 %vm140_vm0, %v97_v46 }
  0x3a   :  { %1772 = vmatmul.mubr.msk.bf16.gmra.mrb[24].mxu0 %vm140_vm0, %v98_v51 }
  0x3b   :  { %1775 = vmatprep.mubr.msk.bf16.mxu0 %vm140_vm0, %v99_v52 }
  0x42   :  { %1776 = vmatmul.mubr.msk.bf16.gmra.mrb[28].mxu0 %vm140_vm0, %v100_v57 }
  0x43   :  { %1779 = vmatprep.mubr.msk.bf16.mxu0 %vm140_vm0, %v101_v58 }
  0x4a   :  { %1780 = vmatmul.mubr.msk.bf16.gmra.mrb[32].mxu0 %vm140_vm0, %v102_v63 }
  0x4b   :  { %1783 = vmatprep.mubr.msk.bf16.mxu0 %vm140_vm0, %v103_v0 }
  0x52   :  { %1784 = vmatmul.mubr.msk.bf16.gmra.mrb[36].mxu0 %vm140_vm0, %v104_v5 }
  0x53   :  { %1787 = vmatprep.mubr.msk.bf16.mxu0 %vm140_vm0, %v105_v6 }
  0x5a   :  { %1788 = vmatmul.mubr.msk.bf16.gmra.mrb[40].mxu0 %vm140_vm0, %v106_v11 }
  0x5b   :  { %1791 = vmatprep.mubr.msk.bf16.mxu0 %vm140_vm0, %v107_v12 }
  0x62   :  { %1792 = vmatmul.mubr.msk.bf16.gmra.mrb[44].mxu0 %vm140_vm0, %v108_v17 }
  0x63   :  { %1795 = vmatprep.mubr.msk.bf16.mxu0 %vm140_vm0, %v109_v19 }
  0x6a   :  { %1796 = vmatmul.mubr.msk.bf16.gmra.mrb[48].mxu0 %vm140_vm0, %v110_v25 }
  0x6b   :  { %1799 = vmatprep.mubr.msk.bf16.mxu0 %vm140_vm0, %v111_v26 }
  0x72   :  { %1800 = vmatmul.mubr.msk.bf16.gmra.mrb[52].mxu0 %vm140_vm0, %v112_v31 }
  0x73   :  { %1803 = vmatprep.mubr.msk.bf16.mxu0 %vm140_vm0, %v113_v32 }
  0x7a   :  { %1804 = vmatmul.mubr.msk.bf16.gmra.mrb[56].mxu0 %vm140_vm0, %v114_v37 }
  0x7b   :  { %1807 = vmatprep.mubr.msk.bf16.mxu0 %vm140_vm0, %v115_v38 }
  0x82   :  { %1808 = vmatmul.mubr.msk.bf16.gmra.mrb[60].mxu0 %vm140_vm0, %v116_v41 }
  0xdd   :  { %v1749_v43 = vpop.f32.mrb[0].mxu0 }
  0xde   :  { %v280_v44 = vadd.f32 %v1749_v43, %v2204_v42  ;;  %v271_v45 = vpop.f32.mrb[1].mxu0 }
  0xdf   :  { %v272_v46 = vadd.f32 %v2204_v42, %v271_v45  ;;  %v1750_v47 = vpop.f32.mrb[2].mxu0 }
  0xe0   :  { %v283_v48 = vadd.f32 %v1750_v47, %v2204_v42  ;;  %v274_v49 = vpop.f32.mrb[3].mxu0  ;;  %v528_v51 = vmax.f32 %v280_v44, 0.0 }
  0xe1   :  { %v275_v50 = vadd.f32 %v2204_v42, %v274_v49  ;;  %v526_v53 = vmax.f32 %v272_v46, 0.0 }
  0xe2   :  { %v529_v52 = vmax.f32 %v283_v48, 0.0 }
  0xe3   :  { %v527_v54 = vmax.f32 %v275_v50, 0.0 }
  0xe4   :  { %v591_v55 = vpack.c.bf16 %v529_v52, %v528_v51 }
  0xe5   :  { %v590_v56 = vpack.c.bf16 %v527_v54, %v526_v53  ;;  %v1753_v57 = vpop.f32.mrb[4].mxu0 }
  0xe6   :  { %v296_v58 = vadd.f32 %v1753_v57, %v2204_v42  ;;  %v287_v59 = vpop.f32.mrb[5].mxu0 }
  0xe7   :  { %v288_v60 = vadd.f32 %v2204_v42, %v287_v59  ;;  %v1754_v61 = vpop.f32.mrb[6].mxu0  ;;  %1827 = vmatprep.mubr.bf16.mxu0 %v590_v56 }
  0xe8   :  { %v299_v62 = vadd.f32 %v1754_v61, %v2204_v42  ;;  %v290_v63 = vpop.f32.mrb[7].mxu0  ;;  %1828 = vmatmul.mubr.bf16.vlgmr.msra.gmra.mrb[64].mxu0 %v591_v55  ;;  %v532_v1 = vmax.f32 %v296_v58, 0.0 }
  0xe9   :  { %v291_v0 = vadd.f32 %v2204_v42, %v290_v63  ;;  %v530_v3 = vmax.f32 %v288_v60, 0.0 }
  0xea   :  { %v533_v2 = vmax.f32 %v299_v62, 0.0 }
  0xeb   :  { %v531_v4 = vmax.f32 %v291_v0, 0.0 }
  0xec   :  { %v593_v5 = vpack.c.bf16 %v533_v2, %v532_v1 }
  0xed   :  { %v1757_v6 = vpop.f32.mrb[8].mxu0  ;;  %v592_v7 = vpack.c.bf16 %v531_v4, %v530_v3 }
  0xee   :  { %v312_v8 = vadd.f32 %v1757_v6, %v2204_v42  ;;  %v303_v9 = vpop.f32.mrb[9].mxu0 }
  0xef   :  { %v304_v10 = vadd.f32 %v2204_v42, %v303_v9  ;;  %v1758_v11 = vpop.f32.mrb[10].mxu0  ;;  %1831 = vmatprep.mubr.bf16.mxu1 %v592_v7 }
  0xf0   :  { %v315_v12 = vadd.f32 %v1758_v11, %v2204_v42  ;;  %v306_v13 = vpop.f32.mrb[11].mxu0  ;;  %1832 = vmatmul.mubr.bf16.vlgmr.msra.gmra.mrb[0].mxu1 %v593_v5  ;;  %v536_v15 = vmax.f32 %v312_v8, 0.0 }
  0xf1   :  { %v307_v14 = vadd.f32 %v2204_v42, %v306_v13  ;;  %v534_v17 = vmax.f32 %v304_v10, 0.0 }
  0xf2   :  { %v537_v16 = vmax.f32 %v315_v12, 0.0 }
  0xf3   :  { %v535_v18 = vmax.f32 %v307_v14, 0.0 }
  0xf4   :  { %v595_v19 = vpack.c.bf16 %v537_v16, %v536_v15 }
  0xf5   :  { %v594_v20 = vpack.c.bf16 %v535_v18, %v534_v17  ;;  %v1761_v21 = vpop.f32.mrb[12].mxu0 }
  0xf6   :  { %v328_v22 = vadd.f32 %v1761_v21, %v2204_v42  ;;  %v319_v23 = vpop.f32.mrb[13].mxu0 }
  0xf7   :  { %v320_v24 = vadd.f32 %v2204_v42, %v319_v23  ;;  %v1762_v25 = vpop.f32.mrb[14].mxu0  ;;  %1835 = vmatprep.mubr.bf16.mxu1 %v594_v20 }
  0xf8   :  { %v331_v26 = vadd.f32 %v1762_v25, %v2204_v42  ;;  %v322_v27 = vpop.f32.mrb[15].mxu0  ;;  %1836 = vmatmul.mubr.bf16.gmra.mrb[4].mxu1 %v595_v19  ;;  %v540_v29 = vmax.f32 %v328_v22, 0.0 }
  0xf9   :  { %v323_v28 = vadd.f32 %v2204_v42, %v322_v27  ;;  %v538_v31 = vmax.f32 %v320_v24, 0.0 }
  0xfa   :  { %v541_v30 = vmax.f32 %v331_v26, 0.0 }
  0xfb   :  { %v539_v32 = vmax.f32 %v323_v28, 0.0 }
  0xfc   :  { %v597_v33 = vpack.c.bf16 %v541_v30, %v540_v29 }
  0xfd   :  { %v596_v34 = vpack.c.bf16 %v539_v32, %v538_v31  ;;  %v1765_v35 = vpop.f32.mrb[16].mxu0 }
  0xfe   :  { %v344_v36 = vadd.f32 %v1765_v35, %v2204_v42  ;;  %v335_v37 = vpop.f32.mrb[17].mxu0 }
  0xff   :  { %v336_v38 = vadd.f32 %v2204_v42, %v335_v37  ;;  %v1766_v39 = vpop.f32.mrb[18].mxu0  ;;  %1839 = vmatprep.mubr.bf16.mxu1 %v596_v34 }
 0x100   :  { %v347_v40 = vadd.f32 %v1766_v39, %v2204_v42  ;;  %v338_v41 = vpop.f32.mrb[19].mxu0  ;;  %1840 = vmatmul.mubr.bf16.gmra.mrb[8].mxu1 %v597_v33  ;;  %v544_v44 = vmax.f32 %v344_v36, 0.0 }
 0x101   :  { %v339_v43 = vadd.f32 %v2204_v42, %v338_v41  ;;  %v542_v46 = vmax.f32 %v336_v38, 0.0 }
 0x102   :  { %v545_v45 = vmax.f32 %v347_v40, 0.0 }
 0x103   :  { %v543_v47 = vmax.f32 %v339_v43, 0.0 }
 0x104   :  { %v599_v48 = vpack.c.bf16 %v545_v45, %v544_v44 }
 0x105   :  { %v598_v49 = vpack.c.bf16 %v543_v47, %v542_v46  ;;  %v1769_v50 = vpop.f32.mrb[20].mxu0 }
 0x106   :  { %v360_v51 = vadd.f32 %v1769_v50, %v2204_v42  ;;  %v351_v52 = vpop.f32.mrb[21].mxu0 }
 0x107   :  { %v352_v53 = vadd.f32 %v2204_v42, %v351_v52  ;;  %v1770_v54 = vpop.f32.mrb[22].mxu0  ;;  %1843 = vmatprep.mubr.bf16.mxu1 %v598_v49 }
 0x108   :  { %v363_v55 = vadd.f32 %v1770_v54, %v2204_v42  ;;  %v354_v56 = vpop.f32.mrb[23].mxu0  ;;  %1844 = vmatmul.mubr.bf16.gmra.mrb[12].mxu1 %v599_v48  ;;  %v548_v58 = vmax.f32 %v360_v51, 0.0 }
 0x109   :  { %v355_v57 = vadd.f32 %v2204_v42, %v354_v56  ;;  %v546_v60 = vmax.f32 %v352_v53, 0.0 }
 0x10a   :  { %v549_v59 = vmax.f32 %v363_v55, 0.0 }
 0x10b   :  { %v547_v61 = vmax.f32 %v355_v57, 0.0 }
 0x10c   :  { %v601_v62 = vpack.c.bf16 %v549_v59, %v548_v58 }
 0x10d   :  { %v600_v63 = vpack.c.bf16 %v547_v61, %v546_v60  ;;  %v1773_v0 = vpop.f32.mrb[24].mxu0 }
 0x10e   :  { %v376_v1 = vadd.f32 %v1773_v0, %v2204_v42  ;;  %v367_v2 = vpop.f32.mrb[25].mxu0 }
 0x10f   :  { %v368_v3 = vadd.f32 %v2204_v42, %v367_v2  ;;  %v1774_v4 = vpop.f32.mrb[26].mxu0  ;;  %1847 = vmatprep.mubr.bf16.mxu1 %v600_v63 }
 0x110   :  { %v379_v5 = vadd.f32 %v1774_v4, %v2204_v42  ;;  %v370_v6 = vpop.f32.mrb[27].mxu0  ;;  %1848 = vmatmul.mubr.bf16.gmra.mrb[16].mxu1 %v601_v62  ;;  %v552_v8 = vmax.f32 %v376_v1, 0.0 }
 0x111   :  { %v371_v7 = vadd.f32 %v2204_v42, %v370_v6  ;;  %v550_v10 = vmax.f32 %v368_v3, 0.0 }
 0x112   :  { %v553_v9 = vmax.f32 %v379_v5, 0.0 }
 0x113   :  { %v551_v11 = vmax.f32 %v371_v7, 0.0 }
 0x114   :  { %v603_v12 = vpack.c.bf16 %v553_v9, %v552_v8 }
 0x115   :  { %v602_v13 = vpack.c.bf16 %v551_v11, %v550_v10  ;;  %v1777_v14 = vpop.f32.mrb[28].mxu0 }
 0x116   :  { %v392_v15 = vadd.f32 %v1777_v14, %v2204_v42  ;;  %v383_v16 = vpop.f32.mrb[29].mxu0 }
 0x117   :  { %v384_v17 = vadd.f32 %v2204_v42, %v383_v16  ;;  %v1778_v18 = vpop.f32.mrb[30].mxu0  ;;  %1851 = vmatprep.mubr.bf16.mxu1 %v602_v13 }
 0x118   :  { %v395_v19 = vadd.f32 %v1778_v18, %v2204_v42  ;;  %v386_v20 = vpop.f32.mrb[31].mxu0  ;;  %1852 = vmatmul.mubr.bf16.gmra.mrb[20].mxu1 %v603_v12  ;;  %v556_v22 = vmax.f32 %v392_v15, 0.0 }
 0x119   :  { %v387_v21 = vadd.f32 %v2204_v42, %v386_v20  ;;  %v554_v24 = vmax.f32 %v384_v17, 0.0 }
 0x11a   :  { %v557_v23 = vmax.f32 %v395_v19, 0.0 }
 0x11b   :  { %v555_v25 = vmax.f32 %v387_v21, 0.0 }
 0x11c   :  { %v605_v26 = vpack.c.bf16 %v557_v23, %v556_v22 }
 0x11d   :  { %v604_v27 = vpack.c.bf16 %v555_v25, %v554_v24  ;;  %v1781_v28 = vpop.f32.mrb[32].mxu0 }
 0x11e   :  { %v408_v29 = vadd.f32 %v1781_v28, %v2204_v42  ;;  %v399_v30 = vpop.f32.mrb[33].mxu0 }
 0x11f   :  { %v400_v31 = vadd.f32 %v2204_v42, %v399_v30  ;;  %v1782_v32 = vpop.f32.mrb[34].mxu0  ;;  %1855 = vmatprep.mubr.bf16.mxu1 %v604_v27 }
 0x120   :  { %v411_v33 = vadd.f32 %v1782_v32, %v2204_v42  ;;  %v402_v34 = vpop.f32.mrb[35].mxu0  ;;  %1856 = vmatmul.mubr.bf16.gmra.mrb[24].mxu1 %v605_v26  ;;  %v560_v36 = vmax.f32 %v408_v29, 0.0 }
 0x121   :  { %v403_v35 = vadd.f32 %v2204_v42, %v402_v34  ;;  %v558_v38 = vmax.f32 %v400_v31, 0.0 }
 0x122   :  { %v561_v37 = vmax.f32 %v411_v33, 0.0 }
 0x123   :  { %v559_v39 = vmax.f32 %v403_v35, 0.0 }
 0x124   :  { %v607_v40 = vpack.c.bf16 %v561_v37, %v560_v36 }
 0x125   :  { %v606_v41 = vpack.c.bf16 %v559_v39, %v558_v38  ;;  %v1785_v43 = vpop.f32.mrb[36].mxu0 }
 0x126   :  { %v424_v44 = vadd.f32 %v1785_v43, %v2204_v42  ;;  %v415_v45 = vpop.f32.mrb[37].mxu0 }
 0x127   :  { %v416_v46 = vadd.f32 %v2204_v42, %v415_v45  ;;  %v1786_v47 = vpop.f32.mrb[38].mxu0  ;;  %1859 = vmatprep.mubr.bf16.mxu1 %v606_v41 }
 0x128   :  { %v427_v48 = vadd.f32 %v1786_v47, %v2204_v42  ;;  %v418_v49 = vpop.f32.mrb[39].mxu0  ;;  %1860 = vmatmul.mubr.bf16.gmra.mrb[28].mxu1 %v607_v40  ;;  %v564_v51 = vmax.f32 %v424_v44, 0.0 }
 0x129   :  { %v419_v50 = vadd.f32 %v2204_v42, %v418_v49  ;;  %v562_v53 = vmax.f32 %v416_v46, 0.0 }
 0x12a   :  { %v565_v52 = vmax.f32 %v427_v48, 0.0 }
 0x12b   :  { %v563_v54 = vmax.f32 %v419_v50, 0.0 }
 0x12c   :  { %v609_v55 = vpack.c.bf16 %v565_v52, %v564_v51 }
 0x12d   :  { %v608_v56 = vpack.c.bf16 %v563_v54, %v562_v53  ;;  %v1789_v57 = vpop.f32.mrb[40].mxu0 }
 0x12e   :  { %v440_v58 = vadd.f32 %v1789_v57, %v2204_v42  ;;  %v431_v59 = vpop.f32.mrb[41].mxu0 }
 0x12f   :  { %v432_v60 = vadd.f32 %v2204_v42, %v431_v59  ;;  %v1790_v61 = vpop.f32.mrb[42].mxu0  ;;  %1863 = vmatprep.mubr.bf16.mxu1 %v608_v56 }
 0x130   :  { %v443_v62 = vadd.f32 %v1790_v61, %v2204_v42  ;;  %v434_v63 = vpop.f32.mrb[43].mxu0  ;;  %1864 = vmatmul.mubr.bf16.gmra.mrb[32].mxu1 %v609_v55  ;;  %v568_v1 = vmax.f32 %v440_v58, 0.0 }
 0x131   :  { %v435_v0 = vadd.f32 %v2204_v42, %v434_v63  ;;  %v566_v3 = vmax.f32 %v432_v60, 0.0 }
 0x132   :  { %v569_v2 = vmax.f32 %v443_v62, 0.0 }
 0x133   :  { %v567_v4 = vmax.f32 %v435_v0, 0.0 }
 0x134   :  { %v611_v5 = vpack.c.bf16 %v569_v2, %v568_v1 }
 0x135   :  { %v610_v6 = vpack.c.bf16 %v567_v4, %v566_v3  ;;  %v1793_v7 = vpop.f32.mrb[44].mxu0 }
 0x136   :  { %v456_v8 = vadd.f32 %v1793_v7, %v2204_v42  ;;  %v447_v9 = vpop.f32.mrb[45].mxu0 }
 0x137   :  { %v448_v10 = vadd.f32 %v2204_v42, %v447_v9  ;;  %v1794_v11 = vpop.f32.mrb[46].mxu0  ;;  %1867 = vmatprep.mubr.bf16.mxu1 %v610_v6 }
 0x138   :  { %v459_v12 = vadd.f32 %v1794_v11, %v2204_v42  ;;  %v450_v13 = vpop.f32.mrb[47].mxu0  ;;  %1868 = vmatmul.mubr.bf16.gmra.mrb[36].mxu1 %v611_v5  ;;  %v572_v15 = vmax.f32 %v456_v8, 0.0 }
 0x139   :  { %v451_v14 = vadd.f32 %v2204_v42, %v450_v13  ;;  %v570_v17 = vmax.f32 %v448_v10, 0.0 }
 0x13a   :  { %v573_v16 = vmax.f32 %v459_v12, 0.0 }
 0x13b   :  { %v571_v18 = vmax.f32 %v451_v14, 0.0 }
 0x13c   :  { %v613_v19 = vpack.c.bf16 %v573_v16, %v572_v15  ;;  %v2273_v15 = vld [vmem:[%s2439_s4] ss:$0 sm:$0xff] }
 0x13d   :  { %v612_v20 = vpack.c.bf16 %v571_v18, %v570_v17  ;;  %v1797_v21 = vpop.f32.mrb[48].mxu0 }
 0x13e   :  { %v472_v22 = vadd.f32 %v1797_v21, %v2204_v42  ;;  %v463_v23 = vpop.f32.mrb[49].mxu0 }
 0x13f   :  { %v464_v24 = vadd.f32 %v2204_v42, %v463_v23  ;;  %v1798_v25 = vpop.f32.mrb[50].mxu0  ;;  %1871 = vmatprep.mubr.bf16.mxu1 %v612_v20 }
 0x140   :  { %v475_v26 = vadd.f32 %v1798_v25, %v2204_v42  ;;  %v466_v27 = vpop.f32.mrb[51].mxu0  ;;  %1872 = vmatmul.mubr.bf16.gmra.mrb[40].mxu1 %v613_v19  ;;  %v576_v29 = vmax.f32 %v472_v22, 0.0 }
 0x141   :  { %v467_v28 = vadd.f32 %v2204_v42, %v466_v27  ;;  %v574_v31 = vmax.f32 %v464_v24, 0.0 }
 0x142   :  { %v577_v30 = vmax.f32 %v475_v26, 0.0 }
 0x143   :  { %v575_v32 = vmax.f32 %v467_v28, 0.0 }
 0x144   :  { %v615_v33 = vpack.c.bf16 %v577_v30, %v576_v29 }
 0x145   :  { %v614_v34 = vpack.c.bf16 %v575_v32, %v574_v31  ;;  %v1801_v35 = vpop.f32.mrb[52].mxu0 }
 0x146   :  { %v488_v36 = vadd.f32 %v1801_v35, %v2204_v42  ;;  %v479_v37 = vpop.f32.mrb[53].mxu0 }
 0x147   :  { %v480_v38 = vadd.f32 %v2204_v42, %v479_v37  ;;  %v1802_v39 = vpop.f32.mrb[54].mxu0  ;;  %1875 = vmatprep.mubr.bf16.mxu1 %v614_v34 }
 0x148   :  { %v491_v40 = vadd.f32 %v1802_v39, %v2204_v42  ;;  %v482_v41 = vpop.f32.mrb[55].mxu0  ;;  %1876 = vmatmul.mubr.bf16.gmra.mrb[44].mxu1 %v615_v33  ;;  %v580_v44 = vmax.f32 %v488_v36, 0.0 }
 0x149   :  { %v483_v43 = vadd.f32 %v2204_v42, %v482_v41  ;;  %v578_v46 = vmax.f32 %v480_v38, 0.0 }
 0x14a   :  { %v581_v45 = vmax.f32 %v491_v40, 0.0 }
 0x14b   :  { %v579_v47 = vmax.f32 %v483_v43, 0.0 }
 0x14c   :  { %v617_v48 = vpack.c.bf16 %v581_v45, %v580_v44 }
 0x14d   :  { %v616_v49 = vpack.c.bf16 %v579_v47, %v578_v46  ;;  %v1805_v50 = vpop.f32.mrb[56].mxu0 }
 0x14e   :  { %v504_v51 = vadd.f32 %v1805_v50, %v2204_v42  ;;  %v495_v52 = vpop.f32.mrb[57].mxu0 }
 0x14f   :  { %v496_v53 = vadd.f32 %v2204_v42, %v495_v52  ;;  %v1806_v54 = vpop.f32.mrb[58].mxu0  ;;  %1879 = vmatprep.mubr.bf16.mxu1 %v616_v49 }
 0x150   :  { %v507_v55 = vadd.f32 %v1806_v54, %v2204_v42  ;;  %v498_v56 = vpop.f32.mrb[59].mxu0  ;;  %1880 = vmatmul.mubr.bf16.gmra.mrb[48].mxu1 %v617_v48  ;;  %v584_v58 = vmax.f32 %v504_v51, 0.0 }
 0x151   :  { %v499_v57 = vadd.f32 %v2204_v42, %v498_v56  ;;  %v582_v60 = vmax.f32 %v496_v53, 0.0 }
 0x152   :  { %v585_v59 = vmax.f32 %v507_v55, 0.0 }
 0x153   :  { %v583_v61 = vmax.f32 %v499_v57, 0.0 }
 0x154   :  { %v619_v62 = vpack.c.bf16 %v585_v59, %v584_v58 }
 0x155   :  { %v618_v63 = vpack.c.bf16 %v583_v61, %v582_v60  ;;  %v1809_v0 = vpop.f32.mrb[60].mxu0 }
 0x156   :  { %v520_v1 = vadd.f32 %v1809_v0, %v2204_v42  ;;  %v511_v2 = vpop.f32.mrb[61].mxu0 }
 0x157   :  { %v512_v3 = vadd.f32 %v2204_v42, %v511_v2  ;;  %v1810_v4 = vpop.f32.mrb[62].mxu0  ;;  %1883 = vmatprep.mubr.bf16.mxu1 %v618_v63 }
 0x158   :  { %v523_v5 = vadd.f32 %v1810_v4, %v2204_v42  ;;  %v514_v6 = vpop.f32.mrb[63].mxu0  ;;  %1884 = vmatmul.mubr.bf16.gmra.mrb[52].mxu1 %v619_v62  ;;  %v588_v8 = vmax.f32 %v520_v1, 0.0 }
 0x159   :  { %v515_v7 = vadd.f32 %v2204_v42, %v514_v6  ;;  %v586_v10 = vmax.f32 %v512_v3, 0.0 }
 0x15a   :  { %v589_v9 = vmax.f32 %v523_v5, 0.0 }
 0x15b   :  { %v587_v11 = vmax.f32 %v515_v7, 0.0 }
 0x15c   :  { %v621_v12 = vpack.c.bf16 %v589_v9, %v588_v8 }
 0x15d   :  { %v620_v13 = vpack.c.bf16 %v587_v11, %v586_v10 }
 0x15f   :  { %1887 = vmatprep.mubr.bf16.mxu1 %v620_v13 }
 0x160   :  { %1888 = vmatmul.mubr.bf16.gmra.mrb[56].mxu1 %v621_v12 }
 0x1bb   :  { %v1829_v14 = vpop.f32.mrb[64].mxu0 }
 0x1bc   :  { %v727_v16 = vpop.f32.mrb[65].mxu0  ;;  %v736_v18 = vadd.f32 %v1829_v14, %v2273_v15 }
 0x1bd   :  { %v1830_v17 = vpop.f32.mrb[66].mxu0  ;;  %v728_v20 = vadd.f32 %v2273_v15, %v727_v16 }
 0x1be   :  { %v739_v42 = vadd.f32 %v1830_v17, %v2273_v15  ;;  %v730_v19 = vpop.f32.mrb[67].mxu0 }
 0x1bf   :  { %v731_v21 = vadd.f32 %v2273_v15, %v730_v19 }
 0x1c0   :  { %v1486_v22 = vpack.c.bf16 %v739_v42, %v736_v18 }
 0x1c1   :  { %v1481_v23 = vpack.c.bf16 %v731_v21, %v728_v20 }
 0x1c2   :  { %1638 = vst [vmem:[%s2440_s5 + $0x8] sm:$0xff] %v1486_v22  }
 0x1c3   :  { %1482 = vst [vmem:[%s2440_s5] sm:$0xff] %v1481_v23   ;;  %v1833_v24 = vpop.f32.mrb[0].mxu1 }
 0x1c4   :  { %v743_v25 = vpop.f32.mrb[1].mxu1  ;;  %v752_v27 = vadd.f32 %v1833_v24, %v2273_v15 }
 0x1c5   :  { %v1834_v26 = vpop.f32.mrb[2].mxu1  ;;  %v744_v30 = vadd.f32 %v2273_v15, %v743_v25 }
 0x1c6   :  { %v755_v28 = vadd.f32 %v1834_v26, %v2273_v15  ;;  %v746_v29 = vpop.f32.mrb[3].mxu1 }
 0x1c7   :  { %v747_v31 = vadd.f32 %v2273_v15, %v746_v29 }
 0x1c8   :  { %v1496_v32 = vpack.c.bf16 %v755_v28, %v752_v27 }
 0x1c9   :  { %v1491_v33 = vpack.c.bf16 %v747_v31, %v744_v30 }
 0x1ca   :  { %1640 = vst [vmem:[%s2440_s5 + $0x18] sm:$0xff] %v1496_v32  }
 0x1cb   :  { %1639 = vst [vmem:[%s2440_s5 + $0x10] sm:$0xff] %v1491_v33   ;;  %v1837_v34 = vpop.f32.mrb[4].mxu1 }
 0x1cc   :  { %v759_v35 = vpop.f32.mrb[5].mxu1  ;;  %v768_v37 = vadd.f32 %v1837_v34, %v2273_v15 }
 0x1cd   :  { %v1838_v36 = vpop.f32.mrb[6].mxu1  ;;  %v760_v40 = vadd.f32 %v2273_v15, %v759_v35 }
 0x1ce   :  { %v771_v38 = vadd.f32 %v1838_v36, %v2273_v15  ;;  %v762_v39 = vpop.f32.mrb[7].mxu1 }
 0x1cf   :  { %v763_v41 = vadd.f32 %v2273_v15, %v762_v39 }
 0x1d0   :  { %v1506_v43 = vpack.c.bf16 %v771_v38, %v768_v37 }
 0x1d1   :  { %v1501_v44 = vpack.c.bf16 %v763_v41, %v760_v40 }
 0x1d2   :  { %1642 = vst [vmem:[%s2440_s5 + $0x28] sm:$0xff] %v1506_v43  }
 0x1d3   :  { %1641 = vst [vmem:[%s2440_s5 + $0x20] sm:$0xff] %v1501_v44   ;;  %v1841_v45 = vpop.f32.mrb[8].mxu1 }
 0x1d4   :  { %v775_v46 = vpop.f32.mrb[9].mxu1  ;;  %v784_v48 = vadd.f32 %v1841_v45, %v2273_v15 }
 0x1d5   :  { %v1842_v47 = vpop.f32.mrb[10].mxu1  ;;  %v776_v51 = vadd.f32 %v2273_v15, %v775_v46 }
 0x1d6   :  { %v787_v49 = vadd.f32 %v1842_v47, %v2273_v15  ;;  %v778_v50 = vpop.f32.mrb[11].mxu1 }
 0x1d7   :  { %v779_v52 = vadd.f32 %v2273_v15, %v778_v50 }
 0x1d8   :  { %v1516_v53 = vpack.c.bf16 %v787_v49, %v784_v48 }
 0x1d9   :  { %v1511_v54 = vpack.c.bf16 %v779_v52, %v776_v51 }
 0x1da   :  { %1644 = vst [vmem:[%s2440_s5 + $0x38] sm:$0xff] %v1516_v53  }
 0x1db   :  { %1643 = vst [vmem:[%s2440_s5 + $0x30] sm:$0xff] %v1511_v54   ;;  %v1845_v55 = vpop.f32.mrb[12].mxu1 }
 0x1dc   :  { %v791_v56 = vpop.f32.mrb[13].mxu1  ;;  %v800_v58 = vadd.f32 %v1845_v55, %v2273_v15 }
 0x1dd   :  { %v1846_v57 = vpop.f32.mrb[14].mxu1  ;;  %v792_v61 = vadd.f32 %v2273_v15, %v791_v56 }
 0x1de   :  { %v803_v59 = vadd.f32 %v1846_v57, %v2273_v15  ;;  %v794_v60 = vpop.f32.mrb[15].mxu1 }
 0x1df   :  { %v795_v62 = vadd.f32 %v2273_v15, %v794_v60 }
 0x1e0   :  { %v1526_v63 = vpack.c.bf16 %v803_v59, %v800_v58 }
 0x1e1   :  { %v1521_v0 = vpack.c.bf16 %v795_v62, %v792_v61 }
 0x1e2   :  { %1646 = vst [vmem:[%s2440_s5 + $0x48] sm:$0xff] %v1526_v63  }
 0x1e3   :  { %1645 = vst [vmem:[%s2440_s5 + $0x40] sm:$0xff] %v1521_v0   ;;  %v1849_v1 = vpop.f32.mrb[16].mxu1 }
 0x1e4   :  { %v807_v2 = vpop.f32.mrb[17].mxu1  ;;  %v816_v4 = vadd.f32 %v1849_v1, %v2273_v15 }
 0x1e5   :  { %v1850_v3 = vpop.f32.mrb[18].mxu1  ;;  %v808_v7 = vadd.f32 %v2273_v15, %v807_v2 }
 0x1e6   :  { %v819_v5 = vadd.f32 %v1850_v3, %v2273_v15  ;;  %v810_v6 = vpop.f32.mrb[19].mxu1 }
 0x1e7   :  { %v811_v8 = vadd.f32 %v2273_v15, %v810_v6 }
 0x1e8   :  { %v1536_v9 = vpack.c.bf16 %v819_v5, %v816_v4 }
 0x1e9   :  { %v1531_v10 = vpack.c.bf16 %v811_v8, %v808_v7 }
 0x1ea   :  { %1648 = vst [vmem:[%s2440_s5 + $0x58] sm:$0xff] %v1536_v9  }
 0x1eb   :  { %1647 = vst [vmem:[%s2440_s5 + $0x50] sm:$0xff] %v1531_v10   ;;  %v1853_v11 = vpop.f32.mrb[20].mxu1 }
 0x1ec   :  { %v823_v12 = vpop.f32.mrb[21].mxu1  ;;  %v832_v14 = vadd.f32 %v1853_v11, %v2273_v15 }
 0x1ed   :  { %v1854_v13 = vpop.f32.mrb[22].mxu1  ;;  %v824_v18 = vadd.f32 %v2273_v15, %v823_v12 }
 0x1ee   :  { %v835_v16 = vadd.f32 %v1854_v13, %v2273_v15  ;;  %v826_v17 = vpop.f32.mrb[23].mxu1 }
 0x1ef   :  { %v827_v42 = vadd.f32 %v2273_v15, %v826_v17 }
 0x1f0   :  { %v1546_v19 = vpack.c.bf16 %v835_v16, %v832_v14 }
 0x1f1   :  { %v1541_v20 = vpack.c.bf16 %v827_v42, %v824_v18 }
 0x1f2   :  { %1650 = vst [vmem:[%s2440_s5 + $0x68] sm:$0xff] %v1546_v19  }
 0x1f3   :  { %1649 = vst [vmem:[%s2440_s5 + $0x60] sm:$0xff] %v1541_v20   ;;  %v1857_v21 = vpop.f32.mrb[24].mxu1 }
 0x1f4   :  { %v839_v22 = vpop.f32.mrb[25].mxu1  ;;  %v848_v24 = vadd.f32 %v1857_v21, %v2273_v15 }
 0x1f5   :  { %v1858_v23 = vpop.f32.mrb[26].mxu1  ;;  %v840_v27 = vadd.f32 %v2273_v15, %v839_v22 }
 0x1f6   :  { %v851_v25 = vadd.f32 %v1858_v23, %v2273_v15  ;;  %v842_v26 = vpop.f32.mrb[27].mxu1 }
 0x1f7   :  { %v843_v28 = vadd.f32 %v2273_v15, %v842_v26 }
 0x1f8   :  { %v1556_v29 = vpack.c.bf16 %v851_v25, %v848_v24 }
 0x1f9   :  { %v1551_v30 = vpack.c.bf16 %v843_v28, %v840_v27 }
 0x1fa   :  { %1652 = vst [vmem:[%s2440_s5 + $0x78] sm:$0xff] %v1556_v29  }
 0x1fb   :  { %1651 = vst [vmem:[%s2440_s5 + $0x70] sm:$0xff] %v1551_v30   ;;  %v1861_v31 = vpop.f32.mrb[28].mxu1 }
 0x1fc   :  { %v855_v32 = vpop.f32.mrb[29].mxu1  ;;  %v864_v34 = vadd.f32 %v1861_v31, %v2273_v15 }
 0x1fd   :  { %v1862_v33 = vpop.f32.mrb[30].mxu1  ;;  %v856_v37 = vadd.f32 %v2273_v15, %v855_v32 }
 0x1fe   :  { %v867_v35 = vadd.f32 %v1862_v33, %v2273_v15  ;;  %v858_v36 = vpop.f32.mrb[31].mxu1 }
 0x1ff   :  { %v859_v38 = vadd.f32 %v2273_v15, %v858_v36 }
 0x200   :  { %v1566_v39 = vpack.c.bf16 %v867_v35, %v864_v34 }
 0x201   :  { %v1561_v40 = vpack.c.bf16 %v859_v38, %v856_v37 }
 0x202   :  { %1654 = vst [vmem:[%s2440_s5 + $0x88] sm:$0xff] %v1566_v39  }
 0x203   :  { %1653 = vst [vmem:[%s2440_s5 + $0x80] sm:$0xff] %v1561_v40   ;;  %v1865_v41 = vpop.f32.mrb[32].mxu1 }
 0x204   :  { %v871_v43 = vpop.f32.mrb[33].mxu1  ;;  %v880_v45 = vadd.f32 %v1865_v41, %v2273_v15 }
 0x205   :  { %v1866_v44 = vpop.f32.mrb[34].mxu1  ;;  %v872_v48 = vadd.f32 %v2273_v15, %v871_v43 }
 0x206   :  { %v883_v46 = vadd.f32 %v1866_v44, %v2273_v15  ;;  %v874_v47 = vpop.f32.mrb[35].mxu1 }
 0x207   :  { %v875_v49 = vadd.f32 %v2273_v15, %v874_v47 }
 0x208   :  { %v1576_v50 = vpack.c.bf16 %v883_v46, %v880_v45 }
 0x209   :  { %v1571_v51 = vpack.c.bf16 %v875_v49, %v872_v48 }
 0x20a   :  { %1656 = vst [vmem:[%s2440_s5 + $0x98] sm:$0xff] %v1576_v50  }
 0x20b   :  { %1655 = vst [vmem:[%s2440_s5 + $0x90] sm:$0xff] %v1571_v51   ;;  %v1869_v52 = vpop.f32.mrb[36].mxu1 }
 0x20c   :  { %v887_v53 = vpop.f32.mrb[37].mxu1  ;;  %v896_v55 = vadd.f32 %v1869_v52, %v2273_v15 }
 0x20d   :  { %v1870_v54 = vpop.f32.mrb[38].mxu1  ;;  %v888_v58 = vadd.f32 %v2273_v15, %v887_v53 }
 0x20e   :  { %v899_v56 = vadd.f32 %v1870_v54, %v2273_v15  ;;  %v890_v57 = vpop.f32.mrb[39].mxu1 }
 0x20f   :  { %v891_v59 = vadd.f32 %v2273_v15, %v890_v57 }
 0x210   :  { %v1586_v60 = vpack.c.bf16 %v899_v56, %v896_v55 }
 0x211   :  { %v1581_v61 = vpack.c.bf16 %v891_v59, %v888_v58 }
 0x212   :  { %1658 = vst [vmem:[%s2440_s5 + $0xa8] sm:$0xff] %v1586_v60  }
 0x213   :  { %1657 = vst [vmem:[%s2440_s5 + $0xa0] sm:$0xff] %v1581_v61   ;;  %v1873_v62 = vpop.f32.mrb[40].mxu1 }
 0x214   :  { %v903_v63 = vpop.f32.mrb[41].mxu1  ;;  %v912_v1 = vadd.f32 %v1873_v62, %v2273_v15 }
 0x215   :  { %v1874_v0 = vpop.f32.mrb[42].mxu1  ;;  %v904_v4 = vadd.f32 %v2273_v15, %v903_v63 }
 0x216   :  { %v915_v2 = vadd.f32 %v1874_v0, %v2273_v15  ;;  %v906_v3 = vpop.f32.mrb[43].mxu1 }
 0x217   :  { %v907_v5 = vadd.f32 %v2273_v15, %v906_v3 }
 0x218   :  { %v1596_v6 = vpack.c.bf16 %v915_v2, %v912_v1 }
 0x219   :  { %v1591_v7 = vpack.c.bf16 %v907_v5, %v904_v4 }
 0x21a   :  { %1660 = vst [vmem:[%s2440_s5 + $0xb8] sm:$0xff] %v1596_v6  }
 0x21b   :  { %1659 = vst [vmem:[%s2440_s5 + $0xb0] sm:$0xff] %v1591_v7   ;;  %v1877_v8 = vpop.f32.mrb[44].mxu1 }
 0x21c   :  { %v919_v9 = vpop.f32.mrb[45].mxu1  ;;  %v928_v11 = vadd.f32 %v1877_v8, %v2273_v15 }
 0x21d   :  { %v1878_v10 = vpop.f32.mrb[46].mxu1  ;;  %v920_v14 = vadd.f32 %v2273_v15, %v919_v9 }
 0x21e   :  { %v931_v12 = vadd.f32 %v1878_v10, %v2273_v15  ;;  %v922_v13 = vpop.f32.mrb[47].mxu1 }
 0x21f   :  { %v923_v16 = vadd.f32 %v2273_v15, %v922_v13 }
 0x220   :  { %v1606_v17 = vpack.c.bf16 %v931_v12, %v928_v11 }
 0x221   :  { %v1601_v18 = vpack.c.bf16 %v923_v16, %v920_v14 }
 0x222   :  { %1662 = vst [vmem:[%s2440_s5 + $0xc8] sm:$0xff] %v1606_v17  }
 0x223   :  { %1661 = vst [vmem:[%s2440_s5 + $0xc0] sm:$0xff] %v1601_v18   ;;  %v1881_v42 = vpop.f32.mrb[48].mxu1 }
 0x224   :  { %v935_v19 = vpop.f32.mrb[49].mxu1  ;;  %v944_v21 = vadd.f32 %v1881_v42, %v2273_v15 }
 0x225   :  { %v1882_v20 = vpop.f32.mrb[50].mxu1  ;;  %v936_v24 = vadd.f32 %v2273_v15, %v935_v19 }
 0x226   :  { %v947_v22 = vadd.f32 %v1882_v20, %v2273_v15  ;;  %v938_v23 = vpop.f32.mrb[51].mxu1 }
 0x227   :  { %v939_v25 = vadd.f32 %v2273_v15, %v938_v23 }
 0x228   :  { %v1616_v26 = vpack.c.bf16 %v947_v22, %v944_v21 }
 0x229   :  { %v1611_v27 = vpack.c.bf16 %v939_v25, %v936_v24 }
 0x22a   :  { %1664 = vst [vmem:[%s2440_s5 + $0xd8] sm:$0xff] %v1616_v26  }
 0x22b   :  { %1663 = vst [vmem:[%s2440_s5 + $0xd0] sm:$0xff] %v1611_v27   ;;  %v1885_v28 = vpop.f32.mrb[52].mxu1 }
 0x22c   :  { %v951_v29 = vpop.f32.mrb[53].mxu1  ;;  %v960_v31 = vadd.f32 %v1885_v28, %v2273_v15 }
 0x22d   :  { %v1886_v30 = vpop.f32.mrb[54].mxu1  ;;  %v952_v34 = vadd.f32 %v2273_v15, %v951_v29 }
 0x22e   :  { %v963_v32 = vadd.f32 %v1886_v30, %v2273_v15  ;;  %v954_v33 = vpop.f32.mrb[55].mxu1 }
 0x22f   :  { %v955_v35 = vadd.f32 %v2273_v15, %v954_v33 }
 0x230   :  { %v1626_v36 = vpack.c.bf16 %v963_v32, %v960_v31 }
 0x231   :  { %v1621_v37 = vpack.c.bf16 %v955_v35, %v952_v34 }
 0x232   :  { %1666 = vst [vmem:[%s2440_s5 + $0xe8] sm:$0xff] %v1626_v36  }
 0x233   :  { %1665 = vst [vmem:[%s2440_s5 + $0xe0] sm:$0xff] %v1621_v37   ;;  %v1889_v38 = vpop.f32.mrb[56].mxu1 }
 0x234   :  { %v967_v39 = vpop.f32.mrb[57].mxu1  ;;  %v976_v41 = vadd.f32 %v1889_v38, %v2273_v15 }
 0x235   :  { %v1890_v40 = vpop.f32.mrb[58].mxu1  ;;  %v968_v45 = vadd.f32 %v2273_v15, %v967_v39 }
 0x236   :  { %v979_v43 = vadd.f32 %v1890_v40, %v2273_v15  ;;  %v970_v44 = vpop.f32.mrb[59].mxu1 }
 0x237   :  { %v971_v46 = vadd.f32 %v2273_v15, %v970_v44 }
 0x238   :  { %v1636_v47 = vpack.c.bf16 %v979_v43, %v976_v41 }
 0x239   :  { %v1631_v48 = vpack.c.bf16 %v971_v46, %v968_v45 }
 0x23a   :  { %1668 = vst [vmem:[%s2440_s5 + $0xf8] sm:$0xff] %v1636_v47  }
 0x23b   :  { %1667 = vst [vmem:[%s2440_s5 + $0xf0] sm:$0xff] %v1631_v48  }

</bundles_post_ra>
